<compile_context>
chip_gen: v7x
topology: tpu7x:2x2x1
jax: 0.10.0
libtpu: 0.0.40
codegen_flags: <defaults>
</compile_context>

<pallas_src>
import functools
import math

import jax
import jax.numpy as jnp
from jax.experimental import pallas as pl
from jax.experimental.pallas import tpu as pltpu


# ----------------------------------------------------------------------------
# Helpers
# ----------------------------------------------------------------------------
def _round_up(x, m):
    return ((x + m - 1) // m) * m


def _choose_tile(m, cap=512):
    """Row tile + padded row count (multiple of the tile). Guarantees >=2 row
    tiles whenever possible so the 'parallel' axis spans both v7x cores."""
    m8 = _round_up(max(m, 8), 8)
    if m8 >= 2 * cap:
        return cap, _round_up(m, cap)
    if m8 <= 16:
        return m8, m8
    tm = _round_up((m8 + 1) // 2, 8)
    return tm, 2 * tm


def _plan_vmem(tm, T, st, H, D, L, n_out):
    """Decide whether all L layer weights can stay VMEM-resident and compute an
    explicit scoped-VMEM limit (double-buffer everything, 50% headroom)."""
    bf, f32 = 2, 4

    def estimate(resident):
        lw = L if resident else 1
        rows = 2 * tm * ((T + st) * bf + 3 * H * f32)       # x_ts/x_samp/node/tod/dow
        emb_w = 2 * ((T + st + H) * H * bf + 4 * H * f32)   # W_ts/W_fused/W_tag + biases
        mlp_w = 2 * lw * (2 * D * D * bf + 2 * D * f32)     # W1/W2 stacks (+ biases)
        head_w = 2 * (D * n_out * bf + n_out * f32)         # W_reg + b_reg
        out_b = 2 * tm * n_out * f32
        acc = tm * D * f32
        return rows + emb_w + mlp_w + head_w + out_b + acc

    resident = estimate(True) <= 40 * 1024 * 1024   # headroom under v7x's 64 MiB
    est = estimate(resident)
    limit = min(max(int(est * 1.5) + (4 << 20), 16 << 20), 64 << 20)
    return resident, limit


# ----------------------------------------------------------------------------
# Fused kernel: embedding (layer 0) + residual MLP stack + regression head
# ----------------------------------------------------------------------------
def _tassgn_kernel(x_ts_ref, x_samp_ref, node_ref, tod_ref, dow_ref,
                   w_ts_ref, b_ts_ref, w_sa_ref, b_sa_ref, w_tag_ref, b_tag_ref,
                   w1_ref, b1_ref, w2_ref, b2_ref, wr_ref, br_ref,
                   pred_ref, acc_ref, *, hid_dim, resident):
    H = hid_dim
    layer = pl.program_id(1)

    @pl.when(layer == 0)
    def _():
        # time-series embedding: (tm, T) @ (T, H)      [bf16 x bf16 -> f32]
        ts = jnp.dot(x_ts_ref[...], w_ts_ref[...],
                     preferred_element_type=jnp.float32) + b_ts_ref[...]
        # per-sample embedding + aggregation fused into one dense dot:
        # (tm, S*T) @ (S*T, H)
        agg = jnp.dot(x_samp_ref[...], w_sa_ref[...],
                      preferred_element_type=jnp.float32) + b_sa_ref[...]
        # TODO(synk): TAGEncoder definition not provided; linear+ReLU stand-in.
        tag = jnp.dot((ts + agg).astype(w_tag_ref.dtype), w_tag_ref[...],
                      preferred_element_type=jnp.float32) + b_tag_ref[...]
        tag = jnp.maximum(tag, 0.0)
        # concat order matches PyTorch: [ts, agg, tag, node, tod, dow],
        # written as direct lane-sliced stores into the resident accumulator.
        acc_ref[:, 0 * H:1 * H] = ts
        acc_ref[:, 1 * H:2 * H] = agg
        acc_ref[:, 2 * H:3 * H] = tag
        acc_ref[:, 3 * H:4 * H] = node_ref[...]
        acc_ref[:, 4 * H:5 * H] = tod_ref[...]
        acc_ref[:, 5 * H:6 * H] = dow_ref[...]

    if resident:                      # weights resident in VMEM, pick layer slab
        w1, b1 = w1_ref[layer], b1_ref[layer]
        w2, b2 = w2_ref[layer], b2_ref[layer]
    else:                             # layer-streamed fallback
        w1, b1 = w1_ref[0], b1_ref[0]
        w2, b2 = w2_ref[0], b2_ref[0]

    h_in = acc_ref[...]               # f32 residual path
    h = jnp.dot(h_in.astype(w1.dtype), w1,
                preferred_element_type=jnp.float32) + b1
    h = jnp.maximum(h, 0.0)           # dropout = identity in eval mode
    y = jnp.dot(h.astype(w2.dtype), w2,
                preferred_element_type=jnp.float32) + b2
    acc_ref[...] = y + h_in

    @pl.when(layer == pl.num_programs(1) - 1)
    def _():
        pred = jnp.dot(acc_ref[...].astype(wr_ref.dtype), wr_ref[...],
                       preferred_element_type=jnp.float32) + br_ref[...]
        pred_ref[...] = pred.astype(pred_ref.dtype)


def tassgn_fused(x_ts, x_samp, node, tod, dow,
                 W_ts, b_ts, W_sa, b_sa, W_tag, b_tag,
                 W1s, B1s, W2s, B2s, W_reg, b_reg,
                 *, hid_dim, tm, resident, vmem_limit):
    m_pad, T = x_ts.shape
    st = x_samp.shape[1]
    H = hid_dim
    L, _, D = W1s.shape
    n_out = W_reg.shape[1]
    grid = (m_pad // tm, L)

    row = lambda i, l: (i, 0)
    const2 = lambda i, l: (0, 0)
    if resident:
        wmap = lambda i, l: (0, 0, 0)
        wblk, bblk = (L, D, D), (L, 1, D)
    else:
        wmap = lambda i, l: (l, 0, 0)
        wblk, bblk = (1, D, D), (1, 1, D)

    kernel = functools.partial(_tassgn_kernel, hid_dim=H, resident=resident)
    return pl.pallas_call(
        kernel,
        out_shape=jax.ShapeDtypeStruct((m_pad, n_out), jnp.float32),
        grid_spec=pltpu.PrefetchScalarGridSpec(
            num_scalar_prefetch=0,
            grid=grid,
            in_specs=[
                pl.BlockSpec((tm, T), row),       # x_ts        (bf16)
                pl.BlockSpec((tm, st), row),      # x_samp      (bf16)
                pl.BlockSpec((tm, H), row),       # node emb    (f32)
                pl.BlockSpec((tm, H), row),       # tod emb     (f32)
                pl.BlockSpec((tm, H), row),       # dow emb     (f32)
                pl.BlockSpec((T, H), const2),     # W_ts        (bf16)
                pl.BlockSpec((1, H), const2),     # b_ts        (f32)
                pl.BlockSpec((st, H), const2),    # W_fused     (bf16)
                pl.BlockSpec((1, H), const2),     # b_fused     (f32)
                pl.BlockSpec((H, H), const2),     # W_tag       (bf16)
                pl.BlockSpec((1, H), const2),     # b_tag       (f32)
                pl.BlockSpec(wblk, wmap),         # W1s         (bf16)
                pl.BlockSpec(bblk, wmap),         # B1s         (f32)
                pl.BlockSpec(wblk, wmap),         # W2s         (bf16)
                pl.BlockSpec(bblk, wmap),         # B2s         (f32)
                pl.BlockSpec((D, n_out), const2), # W_reg       (bf16)
                pl.BlockSpec((1, n_out), const2), # b_reg       (f32)
            ],
            out_specs=pl.BlockSpec((tm, n_out), row),
            scratch_shapes=[pltpu.VMEM((tm, D), jnp.float32)],
        ),
        compiler_params=pltpu.CompilerParams(
            dimension_semantics=("parallel", "arbitrary"),
            vmem_limit_bytes=vmem_limit),
    )(x_ts, x_samp, node, tod, dow,
      W_ts, b_ts, W_sa, b_sa, W_tag, b_tag,
      W1s, B1s, W2s, B2s, W_reg, b_reg)


# ----------------------------------------------------------------------------
# Parameter construction (deterministic, synthetic)
# ----------------------------------------------------------------------------
def init_params(key, *, num_nodes, input_len, output_len, hid_dim, num_samples,
                num_layers, time_of_day_size, day_of_week_size):
    def xavier(k, shape):
        fan_in, fan_out = shape[-2], shape[-1]
        a = math.sqrt(6.0 / (fan_in + fan_out))
        return jax.random.uniform(k, shape, jnp.float32, -a, a)

    keys = iter(jax.random.split(key, 8 + 2 * num_layers))
    p = {}
    p["node_emb"] = xavier(next(keys), (num_nodes, hid_dim))
    p["time_in_day_emb"] = xavier(next(keys), (time_of_day_size, hid_dim))
    p["day_in_week_emb"] = xavier(next(keys), (day_of_week_size, hid_dim))

    # 1x1 convs stored as (in, out) matrices (transpose of PyTorch (out,in,1,1))
    p["W_ts"] = xavier(next(keys), (input_len, hid_dim))
    p["b_ts"] = jnp.zeros((hid_dim,), jnp.float32)
    p["W_se"] = xavier(next(keys), (input_len, hid_dim))        # shared across samples
    p["b_se"] = jnp.zeros((hid_dim,), jnp.float32)
    p["W_agg"] = xavier(next(keys), (hid_dim * num_samples, hid_dim))
    p["b_agg"] = jnp.zeros((hid_dim,), jnp.float32)

    # TODO(synk): TAGEncoder stand-in parameters (linear + ReLU).
    p["W_tag"] = xavier(next(keys), (hid_dim, hid_dim))
    p["b_tag"] = jnp.zeros((hid_dim,), jnp.float32)

    hd = hid_dim * 6
    w1s, w2s = [], []
    for _ in range(num_layers):
        w1s.append(xavier(next(keys), (hd, hd)))
        w2s.append(xavier(next(keys), (hd, hd)))
    p["W1s"] = jnp.stack(w1s)                                  # (L, 6H, 6H)
    p["B1s"] = jnp.zeros((num_layers, 1, hd), jnp.float32)     # (L, 1, 6H)
    p["W2s"] = jnp.stack(w2s)
    p["B2s"] = jnp.zeros((num_layers, 1, hd), jnp.float32)

    p["W_reg"] = xavier(next(keys), (hd, output_len))
    p["b_reg"] = jnp.zeros((output_len,), jnp.float32)
    return p


# ----------------------------------------------------------------------------
# Forward pass
# ----------------------------------------------------------------------------
def tassgn_forward(params, history_data, sample_data, *, hid_dim):
    """history_data: (B, T, N, D>=3)  sample_data: (B, S, T, N, D)
    returns prediction of shape (B, output_len, N, 1) — same as PyTorch."""
    B, T, N, _ = history_data.shape
    S = sample_data.shape[1]
    H = hid_dim
    M = B * N

    # temporal embedding gathers + node broadcast (glue).  Indices are taken
    # raw from the data, exactly as the PyTorch `.type(LongTensor)` gather.
    tod_idx = history_data[:, -1, :, 1].astype(jnp.int32)             # (B, N)
    dow_idx = history_data[:, -1, :, 2].astype(jnp.int32)             # (B, N)
    tod = jnp.take(params["time_in_day_emb"], tod_idx, axis=0).reshape(M, H)
    dow = jnp.take(params["day_in_week_emb"], dow_idx, axis=0).reshape(M, H)
    node = jnp.broadcast_to(params["node_emb"][None], (B, N, H)).reshape(M, H)

    # per-node feature rows (channel-last); bf16 matmul operands
    x_ts = jnp.transpose(history_data[..., 0], (0, 2, 1)).reshape(M, T)
    x_samp = jnp.transpose(sample_data[..., 0], (0, 3, 1, 2)).reshape(M, S * T)
    x_ts = x_ts.astype(jnp.bfloat16)
    x_samp = x_samp.astype(jnp.bfloat16)

    # Fuse the shared per-sample embedding into the aggregation layer:
    #   agg = x_samp @ W_fused + b_fused   (exact; samp never used downstream)
    W_agg_r = params["W_agg"].reshape(S, H, H)
    W_fused = jnp.einsum("th,shk->stk", params["W_se"], W_agg_r).reshape(S * T, H)
    b_fused = jnp.einsum("h,shk->k", params["b_se"], W_agg_r) + params["b_agg"]

    # row tiling + padding of the row dimension
    tm, m_pad = _choose_tile(M)
    pad = m_pad - M
    if pad:
        pr = lambda a: jnp.pad(a, ((0, pad), (0, 0)))
        x_ts, x_samp, node, tod, dow = map(pr, (x_ts, x_samp, node, tod, dow))

    D = 6 * H
    L = params["W1s"].shape[0]
    n_out = params["W_reg"].shape[1]
    resident, vmem_limit = _plan_vmem(tm, T, S * T, H, D, L, n_out)

    bf16 = jnp.bfloat16
    pred = tassgn_fused(
        x_ts, x_samp, node, tod, dow,
        params["W_ts"].astype(bf16), params["b_ts"].reshape(1, H),
        W_fused.astype(bf16), b_fused.reshape(1, H),
        params["W_tag"].astype(bf16), params["b_tag"].reshape(1, H),
        params["W1s"].astype(bf16), params["B1s"],
        params["W2s"].astype(bf16), params["B2s"],
        params["W_reg"].astype(bf16), params["b_reg"].reshape(1, n_out),
        hid_dim=H, tm=tm, resident=resident, vmem_limit=vmem_limit)

    pred = pred[:M].reshape(B, N, n_out)
    pred = jnp.transpose(pred, (0, 2, 1))[..., None]                  # (B,L,N,1)
    return pred


# ----------------------------------------------------------------------------
# Demo
# ----------------------------------------------------------------------------
if __name__ == "__main__":
    # Small, forward-consistent configuration.
    B, T, N, D = 2, 12, 16, 3          # history (B, T, N, D)
    S = 3                              # num_samples
    HID = 32                           # hid_dim
    L_OUT = 12                         # output_len
    NUM_LAYERS = 2
    TOD, DOW = 288, 7

    key = jax.random.PRNGKey(0)
    k_par, k_val, k_tod, k_dow, k_smp = jax.random.split(key, 5)

    params = init_params(
        k_par, num_nodes=N, input_len=T, output_len=L_OUT, hid_dim=HID,
        num_samples=S, num_layers=NUM_LAYERS,
        time_of_day_size=TOD, day_of_week_size=DOW)

    vals = jax.random.normal(k_val, (B, T, N, 1), jnp.float32)
    tod = jax.random.randint(k_tod, (B, T, N, 1), 0, TOD).astype(jnp.float32)
    dow = jax.random.randint(k_dow, (B, T, N, 1), 0, DOW).astype(jnp.float32)
    history_data = jnp.concatenate([vals, tod, dow], axis=-1)        # (B,T,N,3)
    sample_data = jax.random.normal(k_smp, (B, S, T, N, D), jnp.float32)

    fwd = jax.jit(functools.partial(tassgn_forward, hid_dim=HID))
    prediction = fwd(params, history_data, sample_data)
    jax.block_until_ready(prediction)

    assert prediction.shape == (B, L_OUT, N, 1), prediction.shape
    assert bool(jnp.all(jnp.isfinite(prediction)))
    print("KERNEL_OK")
</pallas_src>

<mosaic_0001>
module attributes {stable_mosaic.version = 11 : i64} {
  func.func @_tassgn_kernel(%arg0: i32, %arg1: i32, %arg2: memref<16x12xbf16, #tpu.memory_space<vmem>>, %arg3: memref<16x36xbf16, #tpu.memory_space<vmem>>, %arg4: memref<16x32xf32, #tpu.memory_space<vmem>>, %arg5: memref<16x32xf32, #tpu.memory_space<vmem>>, %arg6: memref<16x32xf32, #tpu.memory_space<vmem>>, %arg7: memref<12x32xbf16, #tpu.memory_space<vmem>>, %arg8: memref<1x32xf32, #tpu.memory_space<vmem>>, %arg9: memref<36x32xbf16, #tpu.memory_space<vmem>>, %arg10: memref<1x32xf32, #tpu.memory_space<vmem>>, %arg11: memref<32x32xbf16, #tpu.memory_space<vmem>>, %arg12: memref<1x32xf32, #tpu.memory_space<vmem>>, %arg13: memref<2x192x192xbf16, #tpu.memory_space<vmem>>, %arg14: memref<2x1x192xf32, #tpu.memory_space<vmem>>, %arg15: memref<2x192x192xbf16, #tpu.memory_space<vmem>>, %arg16: memref<2x1x192xf32, #tpu.memory_space<vmem>>, %arg17: memref<192x12xbf16, #tpu.memory_space<vmem>>, %arg18: memref<1x12xf32, #tpu.memory_space<vmem>>, %arg19: memref<16x12xf32, #tpu.memory_space<vmem>>, %arg20: memref<16x192xf32, #tpu.memory_space<vmem>>) attributes {dimension_semantics = [#tpu.dimension_semantics<parallel>, #tpu.dimension_semantics<arbitrary>], iteration_bounds = array<i64: 2, 2>, scalar_prefetch = 0 : i64, scratch_operands = 1 : i64, tpu.core_type = #tpu.core_type<tc>, window_params = [{transform_indices = @transform_0, window_bounds = array<i64: 16, 12>}, {transform_indices = @transform_1, window_bounds = array<i64: 16, 36>}, {transform_indices = @transform_2, window_bounds = array<i64: 16, 32>}, {transform_indices = @transform_3, window_bounds = array<i64: 16, 32>}, {transform_indices = @transform_4, window_bounds = array<i64: 16, 32>}, {pipeline_mode = #tpu.pipeline_mode<synchronous>, transform_indices = @transform_5, window_bounds = array<i64: 12, 32>}, {pipeline_mode = #tpu.pipeline_mode<synchronous>, transform_indices = @transform_6, window_bounds = array<i64: 1, 32>}, {pipeline_mode = #tpu.pipeline_mode<synchronous>, transform_indices = @transform_7, window_bounds = array<i64: 36, 32>}, {pipeline_mode = #tpu.pipeline_mode<synchronous>, transform_indices = @transform_8, window_bounds = array<i64: 1, 32>}, {pipeline_mode = #tpu.pipeline_mode<synchronous>, transform_indices = @transform_9, window_bounds = array<i64: 32, 32>}, {pipeline_mode = #tpu.pipeline_mode<synchronous>, transform_indices = @transform_10, window_bounds = array<i64: 1, 32>}, {pipeline_mode = #tpu.pipeline_mode<synchronous>, transform_indices = @transform_11, window_bounds = array<i64: 2, 192, 192>}, {pipeline_mode = #tpu.pipeline_mode<synchronous>, transform_indices = @transform_12, window_bounds = array<i64: 2, 1, 192>}, {pipeline_mode = #tpu.pipeline_mode<synchronous>, transform_indices = @transform_13, window_bounds = array<i64: 2, 192, 192>}, {pipeline_mode = #tpu.pipeline_mode<synchronous>, transform_indices = @transform_14, window_bounds = array<i64: 2, 1, 192>}, {pipeline_mode = #tpu.pipeline_mode<synchronous>, transform_indices = @transform_15, window_bounds = array<i64: 192, 12>}, {pipeline_mode = #tpu.pipeline_mode<synchronous>, transform_indices = @transform_16, window_bounds = array<i64: 1, 12>}, {transform_indices = @transform_17, window_bounds = array<i64: 16, 12>}]} {
    %c0_i32 = arith.constant 0 : i32
    %0 = arith.cmpi eq, %arg1, %c0_i32 : i32
    %1 = arith.extui %0 : i1 to i32
    %c0_i32_0 = arith.constant 0 : i32
    %2 = arith.cmpi ne, %1, %c0_i32_0 : i32
    scf.if %2 {
      %c0_15 = arith.constant 0 : index
      %c0_16 = arith.constant 0 : index
      %31 = vector.load %arg2[%c0_15, %c0_16] : memref<16x12xbf16, #tpu.memory_space<vmem>>, vector<16x12xbf16>
      %c0_17 = arith.constant 0 : index
      %c0_18 = arith.constant 0 : index
      %32 = vector.load %arg7[%c0_17, %c0_18] : memref<12x32xbf16, #tpu.memory_space<vmem>>, vector<12x32xbf16>
      %cst_19 = arith.constant dense<0.000000e+00> : vector<16x32xf32>
      %33 = tpu.matmul %31, %32, %cst_19 {dimension_numbers = #tpu.dot_dimension_numbers<[1], [0], [0], [1], [0, 0, 1, 1], [], []>} : vector<16x12xbf16>, vector<12x32xbf16>, vector<16x32xf32> -> vector<16x32xf32>
      %c0_20 = arith.constant 0 : index
      %c0_21 = arith.constant 0 : index
      %34 = vector.load %arg8[%c0_20, %c0_21] : memref<1x32xf32, #tpu.memory_space<vmem>>, vector<1x32xf32>
      %35 = vector.broadcast %34 : vector<1x32xf32> to vector<16x32xf32>
      %36 = arith.addf %33, %35 : vector<16x32xf32>
      %c0_22 = arith.constant 0 : index
      %c0_23 = arith.constant 0 : index
      %37 = vector.load %arg3[%c0_22, %c0_23] : memref<16x36xbf16, #tpu.memory_space<vmem>>, vector<16x36xbf16>
      %c0_24 = arith.constant 0 : index
      %c0_25 = arith.constant 0 : index
      %38 = vector.load %arg9[%c0_24, %c0_25] : memref<36x32xbf16, #tpu.memory_space<vmem>>, vector<36x32xbf16>
      %cst_26 = arith.constant dense<0.000000e+00> : vector<16x32xf32>
      %39 = tpu.matmul %37, %38, %cst_26 {dimension_numbers = #tpu.dot_dimension_numbers<[1], [0], [0], [1], [0, 0, 1, 1], [], []>} : vector<16x36xbf16>, vector<36x32xbf16>, vector<16x32xf32> -> vector<16x32xf32>
      %c0_27 = arith.constant 0 : index
      %c0_28 = arith.constant 0 : index
      %40 = vector.load %arg10[%c0_27, %c0_28] : memref<1x32xf32, #tpu.memory_space<vmem>>, vector<1x32xf32>
      %41 = vector.broadcast %40 : vector<1x32xf32> to vector<16x32xf32>
      %42 = arith.addf %39, %41 : vector<16x32xf32>
      %43 = arith.addf %36, %42 : vector<16x32xf32>
      %44 = arith.truncf %43 : vector<16x32xf32> to vector<16x32xbf16>
      %c0_29 = arith.constant 0 : index
      %c0_30 = arith.constant 0 : index
      %45 = vector.load %arg11[%c0_29, %c0_30] : memref<32x32xbf16, #tpu.memory_space<vmem>>, vector<32x32xbf16>
      %cst_31 = arith.constant dense<0.000000e+00> : vector<16x32xf32>
      %46 = tpu.matmul %44, %45, %cst_31 {dimension_numbers = #tpu.dot_dimension_numbers<[1], [0], [0], [1], [0, 0, 1, 1], [], []>} : vector<16x32xbf16>, vector<32x32xbf16>, vector<16x32xf32> -> vector<16x32xf32>
      %c0_32 = arith.constant 0 : index
      %c0_33 = arith.constant 0 : index
      %47 = vector.load %arg12[%c0_32, %c0_33] : memref<1x32xf32, #tpu.memory_space<vmem>>, vector<1x32xf32>
      %48 = vector.broadcast %47 : vector<1x32xf32> to vector<16x32xf32>
      %49 = arith.addf %46, %48 : vector<16x32xf32>
      %cst_34 = arith.constant 0.000000e+00 : f32
      %50 = vector.broadcast %cst_34 : f32 to vector<16x32xf32>
      %51 = arith.maximumf %49, %50 : vector<16x32xf32>
      %c0_35 = arith.constant 0 : index
      %c0_36 = arith.constant 0 : index
      %52 = vector.load %arg20[%c0_35, %c0_36] : memref<16x192xf32, #tpu.memory_space<vmem>>, vector<16x32xf32>
      tpu.vector_store %arg20[%c0_35, %c0_36], %36 {strides = array<i32>} : memref<16x192xf32, #tpu.memory_space<vmem>>, vector<16x32xf32>,
      %c0_37 = arith.constant 0 : index
      %c32 = arith.constant 32 : index
      %53 = vector.load %arg20[%c0_37, %c32] : memref<16x192xf32, #tpu.memory_space<vmem>>, vector<16x32xf32>
      tpu.vector_store %arg20[%c0_37, %c32], %42 {strides = array<i32>} : memref<16x192xf32, #tpu.memory_space<vmem>>, vector<16x32xf32>,
      %c0_38 = arith.constant 0 : index
      %c64 = arith.constant 64 : index
      %54 = vector.load %arg20[%c0_38, %c64] : memref<16x192xf32, #tpu.memory_space<vmem>>, vector<16x32xf32>
      tpu.vector_store %arg20[%c0_38, %c64], %51 {strides = array<i32>} : memref<16x192xf32, #tpu.memory_space<vmem>>, vector<16x32xf32>,
      %c0_39 = arith.constant 0 : index
      %c0_40 = arith.constant 0 : index
      %55 = vector.load %arg4[%c0_39, %c0_40] : memref<16x32xf32, #tpu.memory_space<vmem>>, vector<16x32xf32>
      %c0_41 = arith.constant 0 : index
      %c96 = arith.constant 96 : index
      %56 = vector.load %arg20[%c0_41, %c96] : memref<16x192xf32, #tpu.memory_space<vmem>>, vector<16x32xf32>
      tpu.vector_store %arg20[%c0_41, %c96], %55 {strides = array<i32>} : memref<16x192xf32, #tpu.memory_space<vmem>>, vector<16x32xf32>,
      %c0_42 = arith.constant 0 : index
      %c0_43 = arith.constant 0 : index
      %57 = vector.load %arg5[%c0_42, %c0_43] : memref<16x32xf32, #tpu.memory_space<vmem>>, vector<16x32xf32>
      %c0_44 = arith.constant 0 : index
      %c128 = arith.constant 128 : index
      %58 = vector.load %arg20[%c0_44, %c128] : memref<16x192xf32, #tpu.memory_space<vmem>>, vector<16x32xf32>
      tpu.vector_store %arg20[%c0_44, %c128], %57 {strides = array<i32>} : memref<16x192xf32, #tpu.memory_space<vmem>>, vector<16x32xf32>,
      %c0_45 = arith.constant 0 : index
      %c0_46 = arith.constant 0 : index
      %59 = vector.load %arg6[%c0_45, %c0_46] : memref<16x32xf32, #tpu.memory_space<vmem>>, vector<16x32xf32>
      %c0_47 = arith.constant 0 : index
      %c160 = arith.constant 160 : index
      %60 = vector.load %arg20[%c0_47, %c160] : memref<16x192xf32, #tpu.memory_space<vmem>>, vector<16x32xf32>
      tpu.vector_store %arg20[%c0_47, %c160], %59 {strides = array<i32>} : memref<16x192xf32, #tpu.memory_space<vmem>>, vector<16x32xf32>,
    } else {
    }
    %3 = arith.index_cast %arg1 : i32 to index
    %c0 = arith.constant 0 : index
    %c0_1 = arith.constant 0 : index
    %4 = vector.load %arg13[%3, %c0, %c0_1] : memref<2x192x192xbf16, #tpu.memory_space<vmem>>, vector<1x192x192xbf16>
    %5 = vector.shape_cast %4 : vector<1x192x192xbf16> to vector<192x192xbf16>
    %6 = arith.index_cast %arg1 : i32 to index
    %c0_2 = arith.constant 0 : index
    %c0_3 = arith.constant 0 : index
    %7 = vector.load %arg14[%6, %c0_2, %c0_3] : memref<2x1x192xf32, #tpu.memory_space<vmem>>, vector<1x1x192xf32>
    %8 = vector.shape_cast %7 : vector<1x1x192xf32> to vector<1x192xf32>
    %9 = arith.index_cast %arg1 : i32 to index
    %c0_4 = arith.constant 0 : index
    %c0_5 = arith.constant 0 : index
    %10 = vector.load %arg15[%9, %c0_4, %c0_5] : memref<2x192x192xbf16, #tpu.memory_space<vmem>>, vector<1x192x192xbf16>
    %11 = vector.shape_cast %10 : vector<1x192x192xbf16> to vector<192x192xbf16>
    %12 = arith.index_cast %arg1 : i32 to index
    %c0_6 = arith.constant 0 : index
    %c0_7 = arith.constant 0 : index
    %13 = vector.load %arg16[%12, %c0_6, %c0_7] : memref<2x1x192xf32, #tpu.memory_space<vmem>>, vector<1x1x192xf32>
    %14 = vector.shape_cast %13 : vector<1x1x192xf32> to vector<1x192xf32>
    %c0_8 = arith.constant 0 : index
    %c0_9 = arith.constant 0 : index
    %15 = vector.load %arg20[%c0_8, %c0_9] : memref<16x192xf32, #tpu.memory_space<vmem>>, vector<16x192xf32>
    %16 = arith.truncf %15 : vector<16x192xf32> to vector<16x192xbf16>
    %cst = arith.constant dense<0.000000e+00> : vector<16x192xf32>
    %17 = tpu.matmul %16, %5, %cst {dimension_numbers = #tpu.dot_dimension_numbers<[1], [0], [0], [1], [0, 0, 1, 1], [], []>} : vector<16x192xbf16>, vector<192x192xbf16>, vector<16x192xf32> -> vector<16x192xf32>
    %18 = vector.broadcast %8 : vector<1x192xf32> to vector<16x192xf32>
    %19 = arith.addf %17, %18 : vector<16x192xf32>
    %cst_10 = arith.constant 0.000000e+00 : f32
    %20 = vector.broadcast %cst_10 : f32 to vector<16x192xf32>
    %21 = arith.maximumf %19, %20 : vector<16x192xf32>
    %22 = arith.truncf %21 : vector<16x192xf32> to vector<16x192xbf16>
    %cst_11 = arith.constant dense<0.000000e+00> : vector<16x192xf32>
    %23 = tpu.matmul %22, %11, %cst_11 {dimension_numbers = #tpu.dot_dimension_numbers<[1], [0], [0], [1], [0, 0, 1, 1], [], []>} : vector<16x192xbf16>, vector<192x192xbf16>, vector<16x192xf32> -> vector<16x192xf32>
    %24 = vector.broadcast %14 : vector<1x192xf32> to vector<16x192xf32>
    %25 = arith.addf %23, %24 : vector<16x192xf32>
    %26 = arith.addf %25, %15 : vector<16x192xf32>
    %c0_12 = arith.constant 0 : index
    %c0_13 = arith.constant 0 : index
    %27 = vector.load %arg20[%c0_12, %c0_13] : memref<16x192xf32, #tpu.memory_space<vmem>>, vector<16x192xf32>
    tpu.vector_store %arg20[%c0_12, %c0_13], %26 {strides = array<i32>} : memref<16x192xf32, #tpu.memory_space<vmem>>, vector<16x192xf32>,
    %c1_i32 = arith.constant 1 : i32
    %28 = arith.cmpi eq, %arg1, %c1_i32 : i32
    %29 = arith.extui %28 : i1 to i32
    %c0_i32_14 = arith.constant 0 : i32
    %30 = arith.cmpi ne, %29, %c0_i32_14 : i32
    scf.if %30 {
      %c0_15 = arith.constant 0 : index
      %c0_16 = arith.constant 0 : index
      %31 = vector.load %arg20[%c0_15, %c0_16] : memref<16x192xf32, #tpu.memory_space<vmem>>, vector<16x192xf32>
      %32 = arith.truncf %31 : vector<16x192xf32> to vector<16x192xbf16>
      %c0_17 = arith.constant 0 : index
      %c0_18 = arith.constant 0 : index
      %33 = vector.load %arg17[%c0_17, %c0_18] : memref<192x12xbf16, #tpu.memory_space<vmem>>, vector<192x12xbf16>
      %cst_19 = arith.constant dense<0.000000e+00> : vector<16x12xf32>
      %34 = tpu.matmul %32, %33, %cst_19 {dimension_numbers = #tpu.dot_dimension_numbers<[1], [0], [0], [1], [0, 0, 1, 1], [], []>} : vector<16x192xbf16>, vector<192x12xbf16>, vector<16x12xf32> -> vector<16x12xf32>
      %c0_20 = arith.constant 0 : index
      %c0_21 = arith.constant 0 : index
      %35 = vector.load %arg18[%c0_20, %c0_21] : memref<1x12xf32, #tpu.memory_space<vmem>>, vector<1x12xf32>
      %36 = vector.broadcast %35 : vector<1x12xf32> to vector<16x12xf32>
      %37 = arith.addf %34, %36 : vector<16x12xf32>
      %c0_22 = arith.constant 0 : index
      %c0_23 = arith.constant 0 : index
      %38 = vector.load %arg19[%c0_22, %c0_23] : memref<16x12xf32, #tpu.memory_space<vmem>>, vector<16x12xf32>
      tpu.vector_store %arg19[%c0_22, %c0_23], %37 {strides = array<i32>} : memref<16x12xf32, #tpu.memory_space<vmem>>, vector<16x12xf32>,
    } else {
    }
    return
  }
  func.func @transform_0(%arg0: i32, %arg1: i32) -> (i32, i32) {
    %c0_i32 = arith.constant 0 : i32
    %c0_i32_0 = arith.constant 0 : i32
    return %arg0, %c0_i32 : i32, i32
  }
  func.func @transform_1(%arg0: i32, %arg1: i32) -> (i32, i32) {
    %c0_i32 = arith.constant 0 : i32
    %c0_i32_0 = arith.constant 0 : i32
    return %arg0, %c0_i32 : i32, i32
  }
  func.func @transform_2(%arg0: i32, %arg1: i32) -> (i32, i32) {
    %c0_i32 = arith.constant 0 : i32
    %c0_i32_0 = arith.constant 0 : i32
    return %arg0, %c0_i32 : i32, i32
  }
  func.func @transform_3(%arg0: i32, %arg1: i32) -> (i32, i32) {
    %c0_i32 = arith.constant 0 : i32
    %c0_i32_0 = arith.constant 0 : i32
    return %arg0, %c0_i32 : i32, i32
  }
  func.func @transform_4(%arg0: i32, %arg1: i32) -> (i32, i32) {
    %c0_i32 = arith.constant 0 : i32
    %c0_i32_0 = arith.constant 0 : i32
    return %arg0, %c0_i32 : i32, i32
  }
  func.func @transform_5(%arg0: i32, %arg1: i32) -> (i32, i32) {
    %c0_i32 = arith.constant 0 : i32
    %c0_i32_0 = arith.constant 0 : i32
    %c0_i32_1 = arith.constant 0 : i32
    return %c0_i32, %c0_i32_0 : i32, i32
  }
  func.func @transform_6(%arg0: i32, %arg1: i32) -> (i32, i32) {
    %c0_i32 = arith.constant 0 : i32
    %c0_i32_0 = arith.constant 0 : i32
    %c0_i32_1 = arith.constant 0 : i32
    return %c0_i32, %c0_i32_0 : i32, i32
  }
  func.func @transform_7(%arg0: i32, %arg1: i32) -> (i32, i32) {
    %c0_i32 = arith.constant 0 : i32
    %c0_i32_0 = arith.constant 0 : i32
    %c0_i32_1 = arith.constant 0 : i32
    return %c0_i32, %c0_i32_0 : i32, i32
  }
  func.func @transform_8(%arg0: i32, %arg1: i32) -> (i32, i32) {
    %c0_i32 = arith.constant 0 : i32
    %c0_i32_0 = arith.constant 0 : i32
    %c0_i32_1 = arith.constant 0 : i32
    return %c0_i32, %c0_i32_0 : i32, i32
  }
  func.func @transform_9(%arg0: i32, %arg1: i32) -> (i32, i32) {
    %c0_i32 = arith.constant 0 : i32
    %c0_i32_0 = arith.constant 0 : i32
    %c0_i32_1 = arith.constant 0 : i32
    return %c0_i32, %c0_i32_0 : i32, i32
  }
  func.func @transform_10(%arg0: i32, %arg1: i32) -> (i32, i32) {
    %c0_i32 = arith.constant 0 : i32
    %c0_i32_0 = arith.constant 0 : i32
    %c0_i32_1 = arith.constant 0 : i32
    return %c0_i32, %c0_i32_0 : i32, i32
  }
  func.func @transform_11(%arg0: i32, %arg1: i32) -> (i32, i32, i32) {
    %c0_i32 = arith.constant 0 : i32
    %c0_i32_0 = arith.constant 0 : i32
    %c0_i32_1 = arith.constant 0 : i32
    %c0_i32_2 = arith.constant 0 : i32
    return %c0_i32, %c0_i32_0, %c0_i32_1 : i32, i32, i32
  }
  func.func @transform_12(%arg0: i32, %arg1: i32) -> (i32, i32, i32) {
    %c0_i32 = arith.constant 0 : i32
    %c0_i32_0 = arith.constant 0 : i32
    %c0_i32_1 = arith.constant 0 : i32
    %c0_i32_2 = arith.constant 0 : i32
    return %c0_i32, %c0_i32_0, %c0_i32_1 : i32, i32, i32
  }
  func.func @transform_13(%arg0: i32, %arg1: i32) -> (i32, i32, i32) {
    %c0_i32 = arith.constant 0 : i32
    %c0_i32_0 = arith.constant 0 : i32
    %c0_i32_1 = arith.constant 0 : i32
    %c0_i32_2 = arith.constant 0 : i32
    return %c0_i32, %c0_i32_0, %c0_i32_1 : i32, i32, i32
  }
  func.func @transform_14(%arg0: i32, %arg1: i32) -> (i32, i32, i32) {
    %c0_i32 = arith.constant 0 : i32
    %c0_i32_0 = arith.constant 0 : i32
    %c0_i32_1 = arith.constant 0 : i32
    %c0_i32_2 = arith.constant 0 : i32
    return %c0_i32, %c0_i32_0, %c0_i32_1 : i32, i32, i32
  }
  func.func @transform_15(%arg0: i32, %arg1: i32) -> (i32, i32) {
    %c0_i32 = arith.constant 0 : i32
    %c0_i32_0 = arith.constant 0 : i32
    %c0_i32_1 = arith.constant 0 : i32
    return %c0_i32, %c0_i32_0 : i32, i32
  }
  func.func @transform_16(%arg0: i32, %arg1: i32) -> (i32, i32) {
    %c0_i32 = arith.constant 0 : i32
    %c0_i32_0 = arith.constant 0 : i32
    %c0_i32_1 = arith.constant 0 : i32
    return %c0_i32, %c0_i32_0 : i32, i32
  }
  func.func @transform_17(%arg0: i32, %arg1: i32) -> (i32, i32) {
    %c0_i32 = arith.constant 0 : i32
    %c0_i32_0 = arith.constant 0 : i32
    return %arg0, %c0_i32 : i32, i32
  }
}

</mosaic_0001>

<bundles_post_ra>
// kernel: tassgn_forward.1
= control target key start
LH: loop header
LB: loop body
LE: loop exit
PB: predicated region body
PF: predicated region fallthrough
CT: control target
= control target key end

     0   :  { %s2064_s24 = smov 0   ;;  %s2066_s25 = smov 0   ;;  %s2311_s0 = inlined_call_operand.vmem [shape: bf16[32,12], index: 0, kind: input, shape index: {}]   ;;  %s2312_s1 = inlined_call_operand.vmem [shape: bf16[32,36], index: 1, kind: input, shape index: {}]   ;;  %s2313_s2 = inlined_call_operand.vmem [shape: f32[32,32], index: 2, kind: input, shape index: {}]   ;;  %s2314_s3 = inlined_call_operand.vmem [shape: f32[32,32], index: 3, kind: input, shape index: {}]   ;;  %s2315_s4 = inlined_call_operand.vmem [shape: f32[32,32], index: 4, kind: input, shape index: {}]   ;;  %s2316_s5 = inlined_call_operand.vmem [shape: bf16[12,32], index: 5, kind: input, shape index: {}]   ;;  %s2317_s6 = inlined_call_operand.vmem [shape: f32[1,32], index: 6, kind: input, shape index: {}]   ;;  %s2318_s7 = inlined_call_operand.vmem [shape: bf16[36,32], index: 7, kind: input, shape index: {}]   ;;  %s2319_s8 = inlined_call_operand.vmem [shape: f32[1,32], index: 8, kind: input, shape index: {}]   ;;  %s2320_s9 = inlined_call_operand.vmem [shape: bf16[32,32], index: 9, kind: input, shape index: {}]   ;;  %s2321_s10 = inlined_call_operand.vmem [shape: f32[1,32], index: 10, kind: input, shape index: {}]   ;;  %s2322_s11 = inlined_call_operand.vmem [shape: bf16[2,192,192], index: 11, kind: input, shape index: {}]   ;;  %s2323_s12 = inlined_call_operand.vmem [shape: f32[2,1,192], index: 12, kind: input, shape index: {}]   ;;  %s2324_s13 = inlined_call_operand.vmem [shape: bf16[2,192,192], index: 13, kind: input, shape index: {}]   ;;  %s2325_s14 = inlined_call_operand.vmem [shape: f32[2,1,192], index: 14, kind: input, shape index: {}]   ;;  %s2326_s15 = inlined_call_operand.vmem [shape: bf16[192,12], index: 15, kind: input, shape index: {}]   ;;  %s2327_s16 = inlined_call_operand.vmem [shape: f32[1,12], index: 16, kind: input, shape index: {}]   ;;  %s2328_s17 = inlined_call_operand.vmem [shape: f32[32,12], index: 17, kind: output, shape index: {}]  }
   0x1   :  { %2333 = sst [smem:[#allocation8_spill]] %s2311_s0  ;;  %s2068_s26 = smov 0  }
   0x2   :  { %2334 = sst [smem:[#allocation9_spill]] %s2312_s1  ;;  %s2070_s27 = smov 0  }
   0x3   :  { %2335 = sst [smem:[#allocation10_spill]] %s2323_s12  ;;  %s2072_s28 = smov 0  }
   0x4   :  { %2336 = sst [smem:[#allocation11_spill]] %s2324_s13 }
   0x5   :  { %2337 = sst [smem:[#allocation12_spill]] %s2325_s14 }
   0x6   :  { %2338 = sst [smem:[#allocation13_spill]] %s2326_s15 }
   0x7   :  { %2339 = sst [smem:[#allocation14_spill]] %s2327_s16 }
   0x8 LB: > { %2340 = sst [smem:[#allocation3_spill]] %s1958_s26  ;;  %s36_s29 = sadd.s32 1, %s1958_s26  ;;  %s1966_s28 = sphi %s2072_s28, %s27_s28   ;;  %s1962_s27 = sphi %s2070_s27, %s2356_s27   ;;  %s1958_s26 = sphi %s2068_s26, %s2355_s26   ;;  %s1954_s25 = sphi %s2066_s25, %s2354_s25   ;;  %s1950_s24 = sphi %s2064_s24, %s2353_s24  }
   0x9   : > { %2341 = sst [smem:[#allocation4_spill]] %s1962_s27  ;;  %s39_s0 = sadd.s32 1, %s1962_s27 }
   0xa   : > { %2342 = sst [smem:[#allocation5_spill]] %s1966_s28  ;;  %p37_p0 = scmp.ge.s32.totalorder %s36_s29, 2 }
   0xb   : > { %p1657_p1 = scmp.ge.s32.totalorder %s1966_s28, 1  ;;  %p544_p2 = scmp.lt.s32.totalorder %s1966_s28, 5 }
   0xc   : > { %s2358_s29 = smov (%p37_p0, %s36_s29), 0  ;;  %s2360_s0 = smov (!%p37_p0, %s39_s0), %s1962_s27 }
   0xd   : > { %2343 = sst [smem:[#allocation6_spill]] %s2358_s29  ;;  %p545_p3 = pnand %p1657_p1, %p544_p2 }
   0xe   : > { %p41_p4 = scmp.ge.s32.totalorder %s2360_s0, 2  ;;  %s1658_s30 = sshll.u32 (!%p545_p3), %s1954_s25, 1 }
   0xf   : > { %548 = sbr.rel (%p545_p3) target bundleno = 1346 (0x542), region = 88  ;;  %p617_p5 = scmp.lt.s32.totalorder (!%p545_p3), %s1658_s30, 3 }
  0x10   : > { %s2362_s0 = smov (%p41_p4, %s2360_s0), 0  ;;  %s2345_s21 = sld [smem:[#allocation8_spill]] (!%p545_p3) }
  0x11   : > { %2344 = sst [smem:[#allocation7_spill]] %s2362_s0  ;;  %s2346_s28 = sld [smem:[#allocation9_spill]] (!%p545_p3) }
  0x12   : > { %p1670_p6 = scmp.ne.s32.totalorder (!%p545_p3), %s1950_s24, 0 }
  0x16   : > { %s2364_s30 = smov (!%p617_p5, %s1658_s30), 3  ;;  %656 = sbr.rel (%p1670_p6) target bundleno = 596 (0x254), region = 92 }
  0x17   : > { %s1659_s18 = sshll.u32 %s2364_s30, 2  ;;  %s1663_s19 = sshll.u32 %s2364_s30, 3  ;;  %v1836_v0 = vld [vmem:[%s2318_s7] sm:$0xff] (!%p1670_p6)   ;;  %v1968_v1 = vmov (!%p1670_p6), 0.0   ;;  %v1837_v2 = vld [vmem:[%s2318_s7 + $0x8] sm:$0xff] (!%p1670_p6)   ;;  %vm682_vm0 = vcmask (!%p1670_p6), 1045504  }
  0x18   : > { %s620_s22 = scalar_lea.vmem %s2345_s21, %s1659_s18  ;;  %s626_s16 = scalar_lea.vmem %s2346_s28, %s1659_s18  ;;  %1772 = vmatprep.subr.bf16.mxu1 (!%p1670_p6), %v1968_v1  ;;  %1766 = vmatprep.subr.bf16.mxu0 (!%p1670_p6), %v1968_v1  ;;  %v1838_v3 = vld [vmem:[%s2316_s5] sm:$0x3f] (!%p1670_p6)   ;;  %vm1969_vm1 = vmmov (!%p1670_p6), 0   ;;  %vm765_vm2 = vcmask (!%p1670_p6), 1041408   ;;  %vm678_vm3 = vcmask (!%p1670_p6), 97280   ;;  %vm761_vm4 = vcmask (!%p1670_p6), 293888  }
  0x19   : > { %s2105_s15 = scalar_lea.vmem %s2313_s2, %s1663_s19  ;;  %s2110_s25 = scalar_lea.vmem %s2314_s3, %s1663_s19  ;;  %1773 = vmatpush3.bf16.msra.mxu1 (!%p1670_p6), %v1836_v0  ;;  %v684_v4 = vsel (!%p1670_p6), %vm682_vm0, %v1838_v3, 0  ;;  %1768 = vmatprep.mubr.msk.bf16.mxu0 (!%p1670_p6), %vm1969_vm1, %v1968_v1  ;;  %v1839_v5 = vld [vmem:[%s620_s22] sm:$0xff] (!%p1670_p6)   ;;  %v1840_v6 = vld [vmem:[%s2318_s7 + $0x10] ss:$0 sps:$4 sm:$0x33] (!%p1670_p6)   ;;  %v1843_v11 = vld [vmem:[%s2320_s9 + $0x8] sm:$0xff] (!%p1670_p6)  }
  0x1a   : > { %s2115_s13 = scalar_lea.vmem %s2315_s4, %s1663_s19  ;;  %s2120_s26 = scalar_lea.vmem %s2328_s17, %s1663_s19  ;;  %1774 = vmatprep.subr.bf16.mxu1 (!%p1670_p6), %v1968_v1  ;;  %1778 = vmatprep.mubr.msk.bf16.mxu1 (!%p1670_p6), %vm1969_vm1, %v1968_v1  ;;  %v767_v7 = vsel (!%p1670_p6), %vm765_vm2, %v1840_v6, 0  ;;  %v1841_v8 = vld [vmem:[%s626_s16] sm:$0xff] (!%p1670_p6)   ;;  %vm836_vm5 = vcmask (!%p1670_p6), 261120   ;;  %v908_v29 = vld [vmem:[%s2105_s15 + $0x8] sm:$0xff] (!%p1670_p6)  ;;  %vm893_vm6 = vcmask (!%p1670_p6), 523520   ;;  %vm904_vm7 = vcmask (!%p1670_p6), 785920  }
  0x1b   : > { %1767 = vmatpush3.bf16.msra.mxu0 (!%p1670_p6), %v684_v4  ;;  %v907_v9 = vld [vmem:[%s2105_s15] sm:$0xff] (!%p1670_p6)  ;;  %s1970_s21 = smov (!%p1670_p6), 96   ;;  %s1971_s14 = smov (!%p1670_p6), 32   ;;  %v921_v36 = vld [vmem:[%s2110_s25 + $0x8] sm:$0xff] (!%p1670_p6)  ;;  %vm917_vm8 = vcmask (!%p1670_p6), 1048320  }
  0x1c   : > { %1782 = vmatprep.subr.bf16.mxu0 (!%p1670_p6), %v1968_v1  ;;  %911 = vrot.lane.b32.xlu0 (!%p1670_p6), %v907_v9, %s1970_s21  ;;  %v1842_v10 = vld [vmem:[%s2320_s9] sm:$0xff] (!%p1670_p6)   ;;  %923 = vst.msk [vmem:[#allocation2 + $0x18] sm:$0xff] (!%p1670_p6), %vm836_vm5, %v921_v36  ;;  %s1972_s15 = smov (!%p1670_p6), 64   ;;  %v925_v46 = vld [vmem:[%s2115_s13 + $0x8] sm:$0xff] (!%p1670_p6) }
  0x1d   : > { %1775 = vmatpush3.bf16.msra.mxu1 %v1837_v2  ;;  %v1671_v12 = vld [vmem:[%s2317_s6] ss:$0 sm:$0xff]  ;;  %913 = vrot.lane.b32.xlu1 %v908_v29, %s1970_s21 }
  0x1e   : > { %1776 = vmatprep.subr.bf16.mxu1 %v1968_v1  ;;  %1769 = vmatmul.mubr.msk.bf16.vlgmr.msra.gmra.mrb[0].mxu0 %vm678_vm3, %v1839_v5  ;;  %v1675_v19 = vld [vmem:[%s2319_s8] ss:$0 sm:$0xff] }
  0x1f   : > { %1786 = vmatprep.mubr.msk.bf16.mxu0 %vm1969_vm1, %v1968_v1  ;;  %1783 = vmatpush3.bf16.msra.mxu0 %v1842_v10  ;;  %v924_v30 = vld [vmem:[%s2115_s13] sm:$0xff] }
  0x20   : > { %1784 = vmatprep.subr.bf16.mxu0 %v1968_v1  ;;  %v920_v34 = vld [vmem:[%s2110_s25] sm:$0xff] }
  0x21   : > { %1777 = vmatpush3.bf16.msra.mxu1 %v767_v7  ;;  %v1681_v37 = vld [vmem:[%s2321_s10] ss:$0 sm:$0xff]  ;;  %922 = vst.msk [vmem:[#allocation2 + $0x8] sm:$0xff] %vm836_vm5, %v920_v34 }
  0x23   : > { %1785 = vmatpush3.bf16.msra.mxu0 %v1843_v11 }
  0x24   : > { %1779 = vmatmul.mubr.msk.bf16.vlgmr.msra.gmra.mrb[0].mxu1 %vm761_vm4, %v1841_v8 }
  0x8e   : > { %v912_v31 = vpop.permute.xlu0 %911 }
  0x8f   : > { %v914_v47 = vpop.permute.xlu1 %913 }
  0xf1   : > { %v720_v13 = vpop.f32.mrb[0].mxu0 }
  0xf2   : > { %v721_v14 = vadd.f32 %v1671_v12, %v720_v13  ;;  %v1770_v15 = vpop.f32.mrb[1].mxu0 }
  0xf3   : > { %v723_v16 = vpop.f32.mrb[2].mxu0 }
  0xf4   : > { %883 = vst.msk [vmem:[#allocation2] sm:$0xff] %vm836_vm5, %v721_v14  ;;  %v724_v17 = vadd.f32 %v1671_v12, %v723_v16  ;;  %v1771_v18 = vpop.f32.mrb[3].mxu0 }
  0xf6   : > { %884 = vst.msk [vmem:[#allocation2 + $0x10] sm:$0xff] %vm836_vm5, %v724_v17 }
  0xf7   : > { %v803_v20 = vpop.f32.mrb[0].mxu1 }
  0xf8   : > { %v804_v21 = vadd.f32 %v1675_v19, %v803_v20  ;;  %v1780_v22 = vpop.f32.mrb[1].mxu1 }
  0xf9   : > { %v806_v23 = vpop.f32.mrb[2].mxu1 }
  0xfa   : > { %v810_v24 = vadd.f32 %v804_v21, %v721_v14  ;;  %v807_v25 = vadd.f32 %v1675_v19, %v806_v23  ;;  %887 = vrot.lane.b32.xlu0 %v804_v21, %s1971_s14  ;;  %v1781_v26 = vpop.f32.mrb[3].mxu1 }
  0xfc   : > { %v811_v27 = vadd.f32 %v807_v25, %v724_v17 }
  0xfe   : > { %v812_v28 = vpack.c.bf16 %v811_v27, %v810_v24  ;;  %889 = vrot.lane.b32.xlu0 %v807_v25, %s1971_s14 }
 0x100   : > { %1787 = vmatmul.mubr.msk.bf16.vlgmr.msra.gmra.mrb[4].mxu0 %vm836_vm5, %v812_v28 }
 0x102   : > { %928 = vrot.lane.b32.xlu0 %v924_v30, %s1971_s14 }
 0x16c   : > { %v888_v32 = vpop.permute.xlu0 %887 }
 0x16d   : > { %894 = vst.msk [vmem:[#allocation2] sm:$0xff] %vm893_vm6, %v888_v32 }
 0x170   : > { %v890_v33 = vpop.permute.xlu0 %889 }
 0x171   : > { %895 = vst.msk [vmem:[#allocation2 + $0x10] sm:$0xff] %vm893_vm6, %v890_v33 }
 0x174   : > { %v929_v35 = vpop.permute.xlu0 %928 }
 0x175   : > { %934 = vst.msk [vmem:[#allocation2 + $0x8] sm:$0xff] %vm893_vm6, %v929_v35 }
 0x1d3   : > { %v874_v38 = vpop.f32.mrb[4].mxu0 }
 0x1d4   : > { %v875_v39 = vadd.f32 %v1681_v37, %v874_v38  ;;  %v1788_v40 = vpop.f32.mrb[5].mxu0 }
 0x1d5   : > { %v877_v41 = vpop.f32.mrb[6].mxu0 }
 0x1d6   : > { %v881_v42 = vmax.f32 %v875_v39, 0.0  ;;  %v878_v43 = vadd.f32 %v1681_v37, %v877_v41  ;;  %v1789_v44 = vpop.f32.mrb[7].mxu0 }
 0x1d8   : > { %898 = vrot.lane.b32.xlu1 %v881_v42, %s1972_s15  ;;  %v882_v45 = vmax.f32 %v878_v43, 0.0 }
 0x1dc   : > { %900 = vrot.lane.b32.xlu1 %v882_v45, %s1972_s15 }
 0x1e0   : > { %930 = vrot.lane.b32.xlu1 %v925_v46, %s1971_s14 }
 0x24a   : > { %v899_v48 = vpop.permute.xlu1 %898 }
 0x24b   : > { %905 = vst.msk [vmem:[#allocation2] sm:$0xff] %vm904_vm7, %v899_v48 }
 0x24c   : > { %918 = vst.msk [vmem:[#allocation2] sm:$0xff] %vm917_vm8, %v912_v31 }
 0x24e   : > { %v901_v49 = vpop.permute.xlu1 %900 }
 0x24f   : > { %906 = vst.msk [vmem:[#allocation2 + $0x10] sm:$0xff] %vm904_vm7, %v901_v49 }
 0x250   : > { %919 = vst.msk [vmem:[#allocation2 + $0x10] sm:$0xff] %vm917_vm8, %v914_v47 }
 0x252   : > { %v931_v50 = vpop.permute.xlu1 %930 }
 0x253   : > { %935 = vst.msk [vmem:[#allocation2 + $0x18] sm:$0xff] %vm893_vm6, %v931_v50 }
 0x254 PF: > { %s1755_s25 = smul.u32 192, %s1950_s24  ;;  %v2172_v51 = vld [vmem:[#allocation2 + $0x8] sm:$0xff]  ;;  %vm1131_vm9 = vcmask 523264   ;;  %s2347_s22 = sld [smem:[#allocation11_spill]]  ;;  %v994_v28 = vld [vmem:[#allocation2] sm:$0xff]  ;;  %v1001_v41 = vlaneseq }
 0x255   : > { %s1686_s30 = sshll.u32 %s1950_s24, 1  ;;  %s2348_s20 = sld [smem:[#allocation10_spill]] }
 0x256   : > { %s2181_s18 = scalar_lea.vmem %s2322_s11, %s1755_s25  ;;  %v1002_v42 = vshrl.u32 %v1001_v41, 7  ;;  %s2349_s29 = sld [smem:[#allocation12_spill]] }
 0x257   : > { %v1844_v54 = vld [vmem:[%s2181_s18 + $0x4] ss:$8 sps:$4 sm:$0xff]   ;;  %v1846_v55 = vld [vmem:[%s2181_s18] ss:$8 sps:$4 sm:$0xff]   ;;  %v1847_v56 = vld [vmem:[%s2181_s18 + $0x14] ss:$8 sps:$4 sm:$0xff]  }
 0x258   : > { %1135 = vmatprep.subr.bf16.mxu0 %v1844_v54  ;;  %v1849_v57 = vld [vmem:[%s2181_s18 + $0x10] ss:$8 sps:$4 sm:$0xff]   ;;  %v1850_v58 = vld [vmem:[%s2181_s18 + $0x24] ss:$8 sps:$4 sm:$0xff]   ;;  %v1852_v59 = vld [vmem:[%s2181_s18 + $0x20] ss:$8 sps:$4 sm:$0xff]  }
 0x259   : > { %1136 = vmatpush1.bf16.msra.mxu0 %v1846_v55  ;;  %v1853_v60 = vld [vmem:[%s2181_s18 + $0x34] ss:$8 sps:$4 sm:$0xff]   ;;  %v1855_v61 = vld [vmem:[%s2181_s18 + $0x30] ss:$8 sps:$4 sm:$0xff]   ;;  %v1856_v62 = vld [vmem:[%s2181_s18 + $0x44] ss:$8 sps:$4 sm:$0xff]  }
 0x25a   : > { %v2174_v52 = vld [vmem:[#allocation2 + $0x18] sm:$0xff]  ;;  %1137 = vmatprep.subr.bf16.mxu0 %v1847_v56  ;;  %s2196_s23 = scalar_lea.vmem %s2347_s22, %s1755_s25  ;;  %v1858_v63 = vld [vmem:[%s2181_s18 + $0x40] ss:$8 sps:$4 sm:$0xff]   ;;  %v1862_v5 = vld [vmem:[%s2181_s18 + $0x64] ss:$8 sps:$4 sm:$0xff]   ;;  %v1003_v43 = vsub.s32 0, %v1002_v42 }
 0x25b   : > { %v999_v53 = vpack.c.bf16 %v2174_v52, %v2172_v51  ;;  %v1859_v0 = vld [vmem:[%s2181_s18 + $0x54] ss:$8 sps:$4 sm:$0xff]   ;;  %v1880_v1 = vld [vmem:[%s2196_s23 + $0x4] ss:$8 sps:$4 sm:$0xff]   ;;  %v1882_v2 = vld [vmem:[%s2196_s23] ss:$8 sps:$4 sm:$0xff]   ;;  %s964_s27 = scalar_lea.vmem %s2348_s20, %s1686_s30 }
 0x25c   : > { %v1861_v3 = vld [vmem:[%s2181_s18 + $0x50] ss:$8 sps:$4 sm:$0xff]   ;;  %1318 = vmatprep.subr.bf16.mxu1 %v1880_v1  ;;  %v1883_v4 = vld [vmem:[%s2196_s23 + $0x14] ss:$8 sps:$4 sm:$0xff]   ;;  %v1886_v7 = vld [vmem:[%s2196_s23 + $0x24] ss:$8 sps:$4 sm:$0xff]   ;;  %s992_s12 = scalar_lea.vmem %s2349_s29, %s1686_s30 }
 0x25d   : > { %1712 = vmatprep.mubr.msk.bf16.mxu0 %vm1131_vm9, %v999_v53  ;;  %1138 = vmatpush1.bf16.msra.mxu0 %v1849_v57  ;;  %v1885_v6 = vld [vmem:[%s2196_s23 + $0x10] ss:$8 sps:$4 sm:$0xff]   ;;  %v1864_v8 = vld [vmem:[%s2181_s18 + $0x60] ss:$8 sps:$4 sm:$0xff]   ;;  %v1865_v9 = vld [vmem:[%s2181_s18 + $0x74] ss:$8 sps:$4 sm:$0xff]  }
 0x25e   : > { %1139 = vmatprep.subr.bf16.mxu0 %v1850_v58  ;;  %1319 = vmatpush1.bf16.msra.mxu1 %v1882_v2  ;;  %v1888_v10 = vld [vmem:[%s2196_s23 + $0x20] ss:$8 sps:$4 sm:$0xff]   ;;  %v1889_v11 = vld [vmem:[%s2196_s23 + $0x34] ss:$8 sps:$4 sm:$0xff]   ;;  %v1867_v12 = vld [vmem:[%s2181_s18 + $0x70] ss:$8 sps:$4 sm:$0xff]  }
 0x25f   : > { %1320 = vmatprep.subr.bf16.mxu1 %v1883_v4  ;;  %v1868_v13 = vld [vmem:[%s2181_s18 + $0x84] ss:$8 sps:$4 sm:$0xff]   ;;  %v1891_v14 = vld [vmem:[%s2196_s23 + $0x30] ss:$8 sps:$4 sm:$0xff]   ;;  %v1870_v16 = vld [vmem:[%s2181_s18 + $0x80] ss:$8 sps:$4 sm:$0xff]  }
 0x260   : > { %v1892_v15 = vld [vmem:[%s2196_s23 + $0x44] ss:$8 sps:$4 sm:$0xff]   ;;  %v1894_v17 = vld [vmem:[%s2196_s23 + $0x40] ss:$8 sps:$4 sm:$0xff]   ;;  %v1871_v18 = vld [vmem:[%s2181_s18 + $0x94] ss:$8 sps:$4 sm:$0xff]  }
 0x261   : > { %1140 = vmatpush1.bf16.msra.mxu0 %v1852_v59  ;;  %v1895_v19 = vld [vmem:[%s2196_s23 + $0x54] ss:$8 sps:$4 sm:$0xff]   ;;  %v1873_v20 = vld [vmem:[%s2181_s18 + $0x90] ss:$8 sps:$4 sm:$0xff]   ;;  %v1874_v22 = vld [vmem:[%s2181_s18 + $0xa4] ss:$8 sps:$4 sm:$0xff]  }
 0x262   : > { %1141 = vmatprep.subr.bf16.mxu0 %v1853_v60  ;;  %1321 = vmatpush1.bf16.msra.mxu1 %v1885_v6  ;;  %v1897_v21 = vld [vmem:[%s2196_s23 + $0x50] ss:$8 sps:$4 sm:$0xff]   ;;  %v1898_v23 = vld [vmem:[%s2196_s23 + $0x64] ss:$8 sps:$4 sm:$0xff]   ;;  %v1876_v24 = vld [vmem:[%s2181_s18 + $0xa0] ss:$8 sps:$4 sm:$0xff]  }
 0x263   : > { %1322 = vmatprep.subr.bf16.mxu1 %v1886_v7  ;;  %v1900_v25 = vld [vmem:[%s2196_s23 + $0x60] ss:$8 sps:$4 sm:$0xff]   ;;  %v1877_v26 = vld [vmem:[%s2181_s18 + $0xb4] ss:$8 sps:$4 sm:$0xff]   ;;  %v1879_v29 = vld [vmem:[%s2181_s18 + $0xb0] ss:$8 sps:$4 sm:$0xff]  }
 0x264   : > { %v1901_v27 = vld [vmem:[%s2196_s23 + $0x74] ss:$8 sps:$4 sm:$0xff]   ;;  %v1903_v31 = vld [vmem:[%s2196_s23 + $0x70] ss:$8 sps:$4 sm:$0xff]   ;;  %v1904_v32 = vld [vmem:[%s2196_s23 + $0x84] ss:$8 sps:$4 sm:$0xff]  }
 0x265   : > { %1142 = vmatpush1.bf16.msra.mxu0 %v1855_v61  ;;  %v2228_v30 = vld [vmem:[#allocation2 + $0x10] sm:$0xff]  ;;  %v1906_v34 = vld [vmem:[%s2196_s23 + $0x80] ss:$8 sps:$4 sm:$0xff]   ;;  %v1910_v37 = vld [vmem:[%s2196_s23 + $0xa4] ss:$8 sps:$4 sm:$0xff]   ;;  %v1007_v45 = vsub.s32 1, %v1002_v42 }
 0x266   : > { %1143 = vmatprep.subr.bf16.mxu0 %v1856_v62  ;;  %1323 = vmatpush1.bf16.msra.mxu1 %v1888_v10  ;;  %v998_v33 = vpack.c.bf16 %v2228_v30, %v994_v28  ;;  %v1907_v35 = vld [vmem:[%s2196_s23 + $0x94] ss:$8 sps:$4 sm:$0xff]   ;;  %v1909_v36 = vld [vmem:[%s2196_s23 + $0x90] ss:$8 sps:$4 sm:$0xff]   ;;  %v1912_v38 = vld [vmem:[%s2196_s23 + $0xa0] ss:$8 sps:$4 sm:$0xff]  }
 0x267   : > { %1324 = vmatprep.subr.bf16.mxu1 %v1889_v11  ;;  %v1913_v39 = vld [vmem:[%s2196_s23 + $0xb4] ss:$8 sps:$4 sm:$0xff]   ;;  %v1915_v40 = vld [vmem:[%s2196_s23 + $0xb0] ss:$8 sps:$4 sm:$0xff]   ;;  %v965_v44 = vld [vmem:[%s964_s27] sm:$0x3] }
 0x268   : > { %v1004_v46 = vrot.slane %v965_v44, %v1003_v43  ;;  %v1008_v47 = vrot.slane %v965_v44, %v1007_v45  ;;  %p1738_p7 = scmp.ne.s32.totalorder %s1950_s24, 1 }
 0x269   : > { %1144 = vmatpush1.bf16.msra.mxu0 %v1858_v63  ;;  %s2350_s13 = sld [smem:[#allocation13_spill]] (!%p1738_p7)  ;;  %s2351_s23 = sld [smem:[#allocation14_spill]] (!%p1738_p7)  ;;  %vm1526_vm10 = vcmask (!%p1738_p7), 97280  }
 0x26a   : > { %1145 = vmatprep.subr.bf16.mxu0 %v1859_v0  ;;  %1325 = vmatpush1.bf16.msra.mxu1 %v1891_v14  ;;  %v993_v0 = vld [vmem:[%s992_s12] sm:$0x3] }
 0x26b   : > { %1326 = vmatprep.subr.bf16.mxu1 %v1892_v15  ;;  %v1188_v1 = vrot.slane %v993_v0, %v1003_v43  ;;  %v1192_v2 = vrot.slane %v993_v0, %v1007_v45 }
 0x26d   : > { %1146 = vmatpush1.bf16.msra.mxu0 %v1861_v3 }
 0x26e   : > { %1147 = vmatprep.subr.bf16.mxu0 %v1862_v5  ;;  %1327 = vmatpush1.bf16.msra.mxu1 %v1894_v17 }
 0x26f   : > { %1328 = vmatprep.subr.bf16.mxu1 %v1895_v19  ;;  %v1916_v15 = vld [vmem:[%s2350_s13] sm:$0xff] (!%p1738_p7)   ;;  %v1919_v17 = vld [vmem:[%s2350_s13 + $0x18] sm:$0xff] (!%p1738_p7)  }
 0x271   : > { %1148 = vmatpush1.bf16.msra.mxu0 %v1864_v8 }
 0x272   : > { %1149 = vmatprep.subr.bf16.mxu0 %v1865_v9  ;;  %1329 = vmatpush1.bf16.msra.mxu1 %v1897_v21  ;;  %v1920_v21 = vld [vmem:[%s2350_s13 + $0x20] sm:$0xff] (!%p1738_p7)  }
 0x273   : > { %1330 = vmatprep.subr.bf16.mxu1 %v1898_v23  ;;  %v1922_v23 = vld [vmem:[%s2350_s13 + $0x30] sm:$0xff] (!%p1738_p7)  }
 0x275   : > { %1150 = vmatpush1.bf16.msra.mxu0 %v1867_v12 }
 0x276   : > { %1151 = vmatprep.subr.bf16.mxu0 %v1868_v13  ;;  %1331 = vmatpush1.bf16.msra.mxu1 %v1900_v25  ;;  %v1924_v25 = vld [vmem:[%s2350_s13 + $0x40] sm:$0xff] (!%p1738_p7)  }
 0x277   : > { %1332 = vmatprep.subr.bf16.mxu1 %v1901_v27  ;;  %v1926_v27 = vld [vmem:[%s2350_s13 + $0x50] sm:$0xff] (!%p1738_p7)  }
 0x279   : > { %1152 = vmatpush1.bf16.msra.mxu0 %v1870_v16  ;;  %v1973_v16 = vmov (!%p1738_p7), 0  }
 0x27a   : > { %1153 = vmatprep.subr.bf16.mxu0 %v1871_v18  ;;  %1333 = vmatpush1.bf16.msra.mxu1 %v1903_v31 }
 0x27b   : > { %1334 = vmatprep.subr.bf16.mxu1 %v1904_v32  ;;  %v1739_v32 = vld [vmem:[%s2351_s23] ss:$0 sm:$0xff] (!%p1738_p7) }
 0x27d   : > { %1154 = vmatpush1.bf16.msra.mxu0 %v1873_v20 }
 0x27e   : > { %1155 = vmatprep.subr.bf16.mxu0 %v1874_v22  ;;  %1335 = vmatpush1.bf16.msra.mxu1 %v1906_v34  ;;  %v1921_v22 = vld [vmem:[%s2350_s13 + $0x28] sm:$0xff] (!%p1738_p7)  }
 0x27f   : > { %1336 = vmatprep.subr.bf16.mxu1 %v1907_v35 }
 0x281   : > { %1156 = vmatpush1.bf16.msra.mxu0 %v1876_v24  ;;  %v1923_v24 = vld [vmem:[%s2350_s13 + $0x38] sm:$0xff] (!%p1738_p7)  }
 0x282   : > { %1157 = vmatprep.subr.bf16.mxu0 %v1877_v26  ;;  %1337 = vmatpush1.bf16.msra.mxu1 %v1909_v36  ;;  %v1925_v26 = vld [vmem:[%s2350_s13 + $0x48] sm:$0xff] (!%p1738_p7)  }
 0x283   : > { %1338 = vmatprep.subr.bf16.mxu1 %v1910_v37 }
 0x285   : > { %1158 = vmatpush1.bf16.msra.mxu0 %v1879_v29 }
 0x286   : > { %1339 = vmatpush1.bf16.msra.mxu1 %v1912_v38  ;;  %1485 = vmatprep.subr.bf16.mxu0 (!%p1738_p7), %v1973_v16 }
 0x287   : > { %1340 = vmatprep.subr.bf16.mxu1 %v1913_v39 }
 0x288   : > { %1168 = vmatmul.mubr.bf16.vlgmr.msra.gmra.mrb[0].mxu0 %v998_v33 }
 0x289   : > { %1486 = vmatpush1.bf16.msra.mxu0 (!%p1738_p7), %v1916_v15 }
 0x28a   : > { %1341 = vmatpush1.bf16.msra.mxu1 %v1915_v40  ;;  %1487 = vmatprep.subr.bf16.mxu0 (!%p1738_p7), %v1973_v16 }
 0x35b   : > { %v1169_v48 = vpop.f32.mrb[0].mxu0 }
 0x35c   : > { %v1170_v49 = vadd.f32 %v1169_v48, %v1004_v46  ;;  %v1171_v50 = vpop.f32.mrb[1].mxu0 }
 0x35d   : > { %v1172_v53 = vadd.f32 %v1171_v50, %v1008_v47  ;;  %v1173_v54 = vpop.f32.mrb[2].mxu0 }
 0x35e   : > { %v1174_v55 = vadd.f32 %v1173_v54, %v1004_v46  ;;  %v1175_v56 = vpop.f32.mrb[3].mxu0  ;;  %v1178_v58 = vmax.f32 %v1170_v49, 0.0 }
 0x35f   : > { %v1176_v57 = vadd.f32 %v1175_v56, %v1008_v47  ;;  %v1179_v60 = vmax.f32 %v1172_v53, 0.0 }
 0x360   : > { %v1180_v59 = vmax.f32 %v1174_v55, 0.0 }
 0x361   : > { %v1181_v61 = vmax.f32 %v1176_v57, 0.0 }
 0x362   : > { %v1182_v62 = vpack.c.bf16 %v1180_v59, %v1178_v58 }
 0x363   : > { %v1183_v63 = vpack.c.bf16 %v1181_v61, %v1179_v60 }
 0x365   : > { %1737 = vmatprep.mubr.msk.bf16.mxu1 %vm1131_vm9, %v1183_v63 }
 0x366   : > { %1351 = vmatmul.mubr.bf16.vlgmr.msra.gmra.mrb[0].mxu1 %v1182_v62 }
 0x439   : > { %v1352_v3 = vpop.f32.mrb[0].mxu1 }
 0x43a   : > { %v1353_v4 = vadd.f32 %v1352_v3, %v1188_v1  ;;  %v1354_v5 = vpop.f32.mrb[1].mxu1 }
 0x43b   : > { %v1355_v6 = vadd.f32 %v1354_v5, %v1192_v2  ;;  %v1356_v7 = vpop.f32.mrb[2].mxu1  ;;  %1372 = sbr.rel (%p1738_p7) target bundleno = 1346 (0x542), region = 96 }
 0x43c   : > { %v1361_v8 = vadd.f32 %v1353_v4, %v994_v28  ;;  %v1357_v9 = vadd.f32 %v1356_v7, %v1188_v1  ;;  %v1358_v10 = vpop.f32.mrb[3].mxu1  ;;  %v1927_v28 = vld [vmem:[%s2350_s13 + $0x58] sm:$0xff] (!%p1738_p7)  }
 0x43d   : > { %v1362_v11 = vadd.f32 %v1355_v6, %v2172_v51  ;;  %v1359_v12 = vadd.f32 %v1358_v10, %v1192_v2  ;;  %v1917_v51 = vld [vmem:[%s2350_s13 + $0x8] sm:$0xff] (!%p1738_p7)  }
 0x43e   : > { %1365 = vst [vmem:[#allocation2] sm:$0xff] %v1361_v8  ;;  %v1363_v13 = vadd.f32 %v1357_v9, %v2228_v30  ;;  %1488 = vmatpush1.bf16.msra.mxu0 (!%p1738_p7), %v1917_v51 }
 0x43f   : > { %1366 = vst.msk [vmem:[#allocation2 + $0x8] sm:$0xff] %vm1131_vm9, %v1362_v11  ;;  %v1364_v14 = vadd.f32 %v1359_v12, %v2174_v52  ;;  %v1918_v52 = vld [vmem:[%s2350_s13 + $0x10] sm:$0xff] (!%p1738_p7)   ;;  %1489 = vmatprep.subr.bf16.mxu0 (!%p1738_p7), %v1973_v16 }
 0x440   : > { %1367 = vst [vmem:[#allocation2 + $0x10] sm:$0xff] %v1363_v13 }
 0x441   : > { %1368 = vst.msk [vmem:[#allocation2 + $0x18] sm:$0xff] %vm1131_vm9, %v1364_v14 }
 0x442   : > { %1490 = vmatpush1.bf16.msra.mxu0 %v1918_v52 }
 0x443   : > { %1491 = vmatprep.subr.bf16.mxu0 %v1973_v16 }
 0x445   : > { %v1373_v29 = vld [vmem:[#allocation2] sm:$0xff] }
 0x446   : > { %v1374_v18 = vld [vmem:[#allocation2 + $0x8] sm:$0xff]  ;;  %1492 = vmatpush1.bf16.msra.mxu0 %v1919_v17 }
 0x447   : > { %1493 = vmatprep.subr.bf16.mxu0 %v1973_v16  ;;  %v1375_v30 = vld [vmem:[#allocation2 + $0x10] sm:$0xff] }
 0x448   : > { %v1376_v19 = vld [vmem:[#allocation2 + $0x18] sm:$0xff]  ;;  %v1377_v31 = vpack.c.bf16 %v1375_v30, %v1373_v29 }
 0x449   : > { %v1378_v20 = vpack.c.bf16 %v1376_v19, %v1374_v18 }
 0x44a   : > { %1494 = vmatpush1.bf16.msra.mxu0 %v1920_v21 }
 0x44b   : > { %1752 = vmatprep.mubr.msk.bf16.mxu0 %vm1131_vm9, %v1378_v20  ;;  %1495 = vmatprep.subr.bf16.mxu0 %v1973_v16 }
 0x44e   : > { %1496 = vmatpush1.bf16.msra.mxu0 %v1921_v22 }
 0x44f   : > { %1497 = vmatprep.subr.bf16.mxu0 %v1973_v16 }
 0x452   : > { %1498 = vmatpush1.bf16.msra.mxu0 %v1922_v23 }
 0x453   : > { %1499 = vmatprep.subr.bf16.mxu0 %v1973_v16 }
 0x456   : > { %1500 = vmatpush1.bf16.msra.mxu0 %v1923_v24 }
 0x457   : > { %1501 = vmatprep.subr.bf16.mxu0 %v1973_v16 }
 0x45a   : > { %1502 = vmatpush1.bf16.msra.mxu0 %v1924_v25 }
 0x45b   : > { %1503 = vmatprep.subr.bf16.mxu0 %v1973_v16 }
 0x45e   : > { %1504 = vmatpush1.bf16.msra.mxu0 %v1925_v26 }
 0x45f   : > { %1505 = vmatprep.subr.bf16.mxu0 %v1973_v16 }
 0x462   : > { %1506 = vmatpush1.bf16.msra.mxu0 %v1926_v27 }
 0x463   : > { %1507 = vmatprep.subr.bf16.mxu0 %v1973_v16 }
 0x466   : > { %1508 = vmatpush1.bf16.msra.mxu0 %v1927_v28 }
 0x469   : > { %1518 = vmatmul.mubr.bf16.vlgmr.msra.gmra.mrb[0].mxu0 %v1377_v31 }
 0x53c   : > { %v1519_v33 = vpop.f32.mrb[0].mxu0 }
 0x53d   : > { %v1520_v34 = vadd.f32 %v1739_v32, %v1519_v33  ;;  %v1521_v35 = vpop.f32.mrb[1].mxu0 }
 0x53e   : > { %v1522_v36 = vpop.f32.mrb[2].mxu0 }
 0x53f   : > { %1527 = vst.msk [vmem:[%s2120_s26] sm:$0xff] %vm1526_vm10, %v1520_v34  ;;  %v1523_v37 = vadd.f32 %v1739_v32, %v1522_v36  ;;  %v1524_v38 = vpop.f32.mrb[3].mxu0 }
 0x541   : > { %1528 = vst.msk [vmem:[%s2120_s26 + $0x8] sm:$0xff] %vm1526_vm10, %v1523_v37 }
 0x542 PF: > { %s2352_s30 = sld [smem:[#allocation5_spill]]  ;;  %s2353_s24 = sld [smem:[#allocation3_spill]] }
 0x543   : > { %s2354_s25 = sld [smem:[#allocation4_spill]]  ;;  %s2355_s26 = sld [smem:[#allocation6_spill]] }
 0x544   : > { %s2356_s27 = sld [smem:[#allocation7_spill]] }
 0x548   : > { %s27_s28 = sadd.s32 1, %s2352_s30  }
 0x549   : > { %p24_p8 = scmp.ge.s32.totalorder %s27_s28, 6  }
 0x54b   :  { %26 = sbr.rel (!%p24_p8) target bundleno = 8 (0x8), region = 142 }

</bundles_post_ra>
